<compile_context>
chip_gen: v6e
topology: v6e:2x2x1
jax: 0.10.0
libtpu: 0.0.40
codegen_flags: <defaults>
</compile_context>

<pallas_src>
import functools
import math

import jax
import jax.numpy as jnp
from jax.experimental import pallas as pl
from jax.experimental.pallas import tpu as pltpu


def _round_up(n, m):
    return ((n + m - 1) // m) * m


def rnn_fused_kernel(x_ref, wih_ref, whh_ref, brnn_ref,
                     w1_ref, b1_ref, w2_ref, b2_ref,
                     out_ref, h_ref, xproj_ref,
                     *, tc, batch_pad, seq_true, out_valid, unroll, need_mask):
    """One grid step = one time-chunk of Tc steps.
       x_ref:     (Tc*Bp, I)  streamed input chunk (time-major, flattened, batch padded)
       weights:   resident (constant index_map), zero-padded to lane tiles
       out_ref:   (Bp, Op)    lane-dense log-probs, written on the last chunk only
       h_ref:     (Bp, Hp)    persistent hidden state scratch
       xproj_ref: (Tc*Bp, Hp) per-chunk input-projection scratch."""
    c = pl.program_id(0)
    Bp = batch_pad

    # ---- first chunk: h_0 = 0 (the module's torch.rand h_0 is never passed to the RNN) ----
    @pl.when(c == 0)
    def _():
        h_ref[...] = jnp.zeros_like(h_ref)

    # ---- per-chunk input projection: one MXU GEMM, no loop-carried dependence ----
    xproj_ref[...] = (
        jnp.dot(x_ref[...], wih_ref[...], preferred_element_type=jnp.float32)
        + brnn_ref[...]
    )

    # ---- serial recurrence over this chunk: only h @ W_hh + tanh on the critical path ----
    t0 = c * tc

    def step(t, h):
        start = pl.multiple_of(t * Bp, 8)                 # aligned sublane slice
        xp_t = xproj_ref[pl.ds(start, Bp), :]             # (Bp, Hp)
        h_new = jnp.tanh(
            xp_t + jnp.dot(h, whh_ref[...], preferred_element_type=jnp.float32)
        )
        if need_mask:                                      # static: only if S % Tc != 0
            h_new = jnp.where(t0 + t < seq_true, h_new, h)
        return h_new

    h_ref[...] = jax.lax.fori_loop(0, tc, step, h_ref[...], unroll=unroll)

    # ---- last chunk: MLP head + log-softmax (masked padded lanes, lane-dense store) ----
    @pl.when(c == pl.num_programs(0) - 1)
    def _():
        h = h_ref[...]
        a1 = jnp.tanh(
            jnp.dot(h, w1_ref[...], preferred_element_type=jnp.float32) + b1_ref[...]
        )
        logits = jnp.dot(a1, w2_ref[...], preferred_element_type=jnp.float32) + b2_ref[...]
        col = jax.lax.broadcasted_iota(jnp.int32, logits.shape, 1)
        logits = jnp.where(col < out_valid, logits, jnp.full_like(logits, -1e30))
        m = jnp.max(logits, axis=1, keepdims=True)
        s = logits - m
        lse = jnp.log(jnp.sum(jnp.exp(s), axis=1, keepdims=True))
        out_ref[...] = s - lse


@functools.partial(jax.jit, static_argnames=("time_chunk", "unroll"))
def rnn_forward(x, params, *, time_chunk=32, unroll=8):
    """x: (S, B, I) float32 (time-major, like nn.RNN default).  Returns (B, O) log-probs."""
    S, B, I = x.shape
    H = params["w_hh"].shape[0]
    O = params["w2"].shape[1]

    Bp = _round_up(B, 8)
    Hp = _round_up(H, 128)
    Op = _round_up(O, 128)

    Tc = max(1, min(time_chunk, S))
    num_chunks = pl.cdiv(S, Tc)
    S_pad = num_chunks * Tc
    unroll = max(1, min(unroll, Tc))
    chunk_rows = Tc * Bp

    # Batch -> sublane multiple; time padded only up to the chunk boundary (masked in-kernel);
    # feature dim I deliberately left UNpadded (block last dim == full array dim is legal).
    x_p = jnp.pad(x, ((0, S_pad - S), (0, Bp - B), (0, 0))).reshape(S_pad * Bp, I)

    wih = jnp.pad(params["w_ih"], ((0, 0), (0, Hp - H)))          # (I,  Hp)
    whh = jnp.pad(params["w_hh"], ((0, Hp - H), (0, Hp - H)))     # (Hp, Hp)
    brnn = jnp.pad(params["b_rnn"], ((0, 0), (0, Hp - H)))        # (1,  Hp)
    w1 = jnp.pad(params["w1"], ((0, Hp - H), (0, Hp - H)))        # (Hp, Hp)
    b1 = jnp.pad(params["b1"], ((0, 0), (0, Hp - H)))             # (1,  Hp)
    w2 = jnp.pad(params["w2"], ((0, Hp - H), (0, Op - O)))        # (Hp, Op)
    b2 = jnp.pad(params["b2"], ((0, 0), (0, Op - O)))             # (1,  Op)

    kernel = functools.partial(
        rnn_fused_kernel, tc=Tc, batch_pad=Bp, seq_true=S, out_valid=O,
        unroll=unroll, need_mask=(S_pad != S))

    # ---- VMEM budget (bytes): chunked footprint, with headroom; capped at 64 MiB (v7x) ----
    lane_i = _round_up(max(I, 1), 128)            # in-VMEM lane-padded layout of the x chunk
    vmem_bytes = (
        2 * chunk_rows * lane_i * 4               # streamed x chunk, double-buffered
        + chunk_rows * Hp * 4                     # xproj scratch
        + Bp * Hp * 4                             # hidden-state scratch
        + 2 * (lane_i * Hp + 2 * Hp * Hp + Hp * Op + 3 * Hp + Op) * 4   # resident weights
        + 2 * Bp * Op * 4                         # output block
    )
    vmem_limit = int(min(max(2 * vmem_bytes, 4 << 20), 64 << 20))

    cost = pl.CostEstimate(
        flops=int(2 * S * Bp * (I + Hp) * Hp + 2 * Bp * Hp * (Hp + Op)),
        transcendentals=int((S + 1) * Bp * Hp + Bp * Op),
        bytes_accessed=int(x_p.size * 4
                           + (wih.size + whh.size + brnn.size
                              + w1.size + b1.size + w2.size + b2.size) * 4
                           + Bp * Op * 4),
    )

    grid_spec = pltpu.PrefetchScalarGridSpec(
        num_scalar_prefetch=0,
        grid=(num_chunks,),
        in_specs=[
            pl.BlockSpec((chunk_rows, I), lambda c: (c, 0)),   # streamed input chunk
            pl.BlockSpec(wih.shape, lambda c: (0, 0)),          # weights: constant index map
            pl.BlockSpec(whh.shape, lambda c: (0, 0)),          #   -> DMA'd once, resident
            pl.BlockSpec(brnn.shape, lambda c: (0, 0)),
            pl.BlockSpec(w1.shape, lambda c: (0, 0)),
            pl.BlockSpec(b1.shape, lambda c: (0, 0)),
            pl.BlockSpec(w2.shape, lambda c: (0, 0)),
            pl.BlockSpec(b2.shape, lambda c: (0, 0)),
        ],
        out_specs=pl.BlockSpec((Bp, Op), lambda c: (0, 0)),     # resident; written last chunk
        scratch_shapes=[
            pltpu.VMEM((Bp, Hp), jnp.float32),                  # persistent hidden state
            pltpu.VMEM((chunk_rows, Hp), jnp.float32),          # per-chunk x projection
        ],
    )

    out_padded = pl.pallas_call(
        kernel,
        out_shape=jax.ShapeDtypeStruct((Bp, Op), jnp.float32),
        grid_spec=grid_spec,
        compiler_params=pltpu.CompilerParams(
            dimension_semantics=("arbitrary",),                 # time chunks are sequential
            vmem_limit_bytes=vmem_limit,
        ),
        cost_estimate=cost,
    )(x_p, wih, whh, brnn, w1, b1, w2, b2)

    return out_padded[:B, :O]


def init_params(key, input_size, hidden_size, output_size):
    ks = jax.random.split(key, 8)
    k = 1.0 / math.sqrt(hidden_size)
    # nn.RNN params, stored transposed: (in, out) for right-multiplication
    w_ih = jax.random.uniform(ks[0], (input_size, hidden_size), jnp.float32, -k, k)
    w_hh = jax.random.uniform(ks[1], (hidden_size, hidden_size), jnp.float32, -k, k)
    b_ih = jax.random.uniform(ks[2], (1, hidden_size), jnp.float32, -k, k)
    b_hh = jax.random.uniform(ks[3], (1, hidden_size), jnp.float32, -k, k)
    # linear1: custom uniform weight init from the module, default bias init
    bw1 = math.sqrt(6.0) / math.sqrt(2 * hidden_size)
    w1 = jax.random.uniform(ks[4], (hidden_size, hidden_size), jnp.float32, -bw1, bw1)
    b1 = jax.random.uniform(ks[5], (1, hidden_size), jnp.float32, -k, k)
    # linear2
    bw2 = math.sqrt(6.0) / math.sqrt(hidden_size + 5)
    w2 = jax.random.uniform(ks[6], (hidden_size, output_size), jnp.float32, -bw2, bw2)
    b2 = jax.random.uniform(ks[7], (1, output_size), jnp.float32, -k, k)
    return dict(w_ih=w_ih, w_hh=w_hh, b_rnn=b_ih + b_hh, w1=w1, b1=b1, w2=w2, b2=b2)


def reference_forward(x, p):
    """Plain-JAX reference (matches the PyTorch module's forward: zero initial hidden)."""
    S, B, I = x.shape
    H = p["w_hh"].shape[0]
    h = jnp.zeros((B, H), jnp.float32)
    for t in range(S):
        h = jnp.tanh(x[t] @ p["w_ih"] + h @ p["w_hh"] + p["b_rnn"])
    l1 = h @ p["w1"] + p["b1"]
    l2 = jnp.tanh(l1) @ p["w2"] + p["b2"]
    return jax.nn.log_softmax(l2, axis=1)


if __name__ == "__main__":
    seq_len, batch, input_size, hidden_size, output_size = 8, 2, 16, 32, 5

    key = jax.random.PRNGKey(0)
    kx, kp = jax.random.split(key)
    x = jax.random.normal(kx, (seq_len, batch, input_size), jnp.float32)
    params = init_params(kp, input_size, hidden_size, output_size)

    out = rnn_forward(x, params)
    out = jax.block_until_ready(out)

    ref = reference_forward(x, params)
    assert out.shape == (batch, output_size)
    assert jnp.allclose(out, ref, atol=1e-5, rtol=1e-5)

    # Also exercise the multi-chunk / ragged-tail path (S not divisible by Tc).
    S2 = 11
    x2 = jax.random.normal(jax.random.PRNGKey(1), (S2, batch, input_size), jnp.float32)
    out2 = jax.block_until_ready(rnn_forward(x2, params, time_chunk=4))
    assert jnp.allclose(out2, reference_forward(x2, params), atol=1e-5, rtol=1e-5)

    print("KERNEL_OK")
</pallas_src>

<mosaic_0001>
module attributes {stable_mosaic.version = 11 : i64} {
  func.func @rnn_fused_kernel(%arg0: i32, %arg1: memref<64x16xf32, #tpu.memory_space<vmem>>, %arg2: memref<16x128xf32, #tpu.memory_space<vmem>>, %arg3: memref<128x128xf32, #tpu.memory_space<vmem>>, %arg4: memref<1x128xf32, #tpu.memory_space<vmem>>, %arg5: memref<128x128xf32, #tpu.memory_space<vmem>>, %arg6: memref<1x128xf32, #tpu.memory_space<vmem>>, %arg7: memref<128x128xf32, #tpu.memory_space<vmem>>, %arg8: memref<1x128xf32, #tpu.memory_space<vmem>>, %arg9: memref<8x128xf32, #tpu.memory_space<vmem>>, %arg10: memref<8x128xf32, #tpu.memory_space<vmem>>, %arg11: memref<64x128xf32, #tpu.memory_space<vmem>>) attributes {dimension_semantics = [#tpu.dimension_semantics<arbitrary>], iteration_bounds = array<i64: 1>, scalar_prefetch = 0 : i64, scratch_operands = 2 : i64, tpu.core_type = #tpu.core_type<tc>, window_params = [{transform_indices = @transform_0, window_bounds = array<i64: 64, 16>}, {pipeline_mode = #tpu.pipeline_mode<synchronous>, transform_indices = @transform_1, window_bounds = array<i64: 16, 128>}, {pipeline_mode = #tpu.pipeline_mode<synchronous>, transform_indices = @transform_2, window_bounds = array<i64: 128, 128>}, {pipeline_mode = #tpu.pipeline_mode<synchronous>, transform_indices = @transform_3, window_bounds = array<i64: 1, 128>}, {pipeline_mode = #tpu.pipeline_mode<synchronous>, transform_indices = @transform_4, window_bounds = array<i64: 128, 128>}, {pipeline_mode = #tpu.pipeline_mode<synchronous>, transform_indices = @transform_5, window_bounds = array<i64: 1, 128>}, {pipeline_mode = #tpu.pipeline_mode<synchronous>, transform_indices = @transform_6, window_bounds = array<i64: 128, 128>}, {pipeline_mode = #tpu.pipeline_mode<synchronous>, transform_indices = @transform_7, window_bounds = array<i64: 1, 128>}, {pipeline_mode = #tpu.pipeline_mode<synchronous>, transform_indices = @transform_8, window_bounds = array<i64: 8, 128>}]} {
    %c0_i32 = arith.constant 0 : i32
    %0 = arith.cmpi eq, %arg0, %c0_i32 : i32
    %1 = arith.extui %0 : i1 to i32
    %c0_i32_0 = arith.constant 0 : i32
    %2 = arith.cmpi ne, %1, %c0_i32_0 : i32
    scf.if %2 {
      %cst_55 = arith.constant 0.000000e+00 : f32
      %79 = vector.broadcast %cst_55 : f32 to vector<8x128xf32>
      %c0_56 = arith.constant 0 : index
      %c0_57 = arith.constant 0 : index
      %80 = vector.load %arg10[%c0_56, %c0_57] : memref<8x128xf32, #tpu.memory_space<vmem>>, vector<8x128xf32>
      tpu.vector_store %arg10[%c0_56, %c0_57], %79 {strides = array<i32>} : memref<8x128xf32, #tpu.memory_space<vmem>>, vector<8x128xf32>,
    } else {
    }
    %c0 = arith.constant 0 : index
    %c0_1 = arith.constant 0 : index
    %3 = vector.load %arg1[%c0, %c0_1] : memref<64x16xf32, #tpu.memory_space<vmem>>, vector<64x16xf32>
    %c0_2 = arith.constant 0 : index
    %c0_3 = arith.constant 0 : index
    %4 = vector.load %arg2[%c0_2, %c0_3] : memref<16x128xf32, #tpu.memory_space<vmem>>, vector<16x128xf32>
    %cst = arith.constant dense<0.000000e+00> : vector<64x128xf32>
    %5 = tpu.matmul %3, %4, %cst {dimension_numbers = #tpu.dot_dimension_numbers<[1], [0], [0], [1], [0, 0, 1, 1], [], []>} : vector<64x16xf32>, vector<16x128xf32>, vector<64x128xf32> -> vector<64x128xf32>
    %c0_4 = arith.constant 0 : index
    %c0_5 = arith.constant 0 : index
    %6 = vector.load %arg4[%c0_4, %c0_5] : memref<1x128xf32, #tpu.memory_space<vmem>>, vector<1x128xf32>
    %7 = vector.broadcast %6 : vector<1x128xf32> to vector<64x128xf32>
    %8 = arith.addf %5, %7 : vector<64x128xf32>
    %c0_6 = arith.constant 0 : index
    %c0_7 = arith.constant 0 : index
    %9 = vector.load %arg11[%c0_6, %c0_7] : memref<64x128xf32, #tpu.memory_space<vmem>>, vector<64x128xf32>
    tpu.vector_store %arg11[%c0_6, %c0_7], %8 {strides = array<i32>} : memref<64x128xf32, #tpu.memory_space<vmem>>, vector<64x128xf32>,
    %c0_8 = arith.constant 0 : index
    %c0_9 = arith.constant 0 : index
    %10 = vector.load %arg10[%c0_8, %c0_9] : memref<8x128xf32, #tpu.memory_space<vmem>>, vector<8x128xf32>
    %c0_i32_10 = arith.constant 0 : i32
    %c8_i32 = arith.constant 8 : i32
    %11 = arith.muli %c0_i32_10, %c8_i32 : i32
    %12 = tpu.assume_multiple %11, 8 : i32
    %13 = arith.index_cast %12 : i32 to index
    %c0_11 = arith.constant 0 : index
    %14 = vector.load %arg11[%13, %c0_11] : memref<64x128xf32, #tpu.memory_space<vmem>>, vector<8x128xf32>
    %c0_12 = arith.constant 0 : index
    %c0_13 = arith.constant 0 : index
    %15 = vector.load %arg3[%c0_12, %c0_13] : memref<128x128xf32, #tpu.memory_space<vmem>>, vector<128x128xf32>
    %cst_14 = arith.constant dense<0.000000e+00> : vector<8x128xf32>
    %16 = tpu.matmul %10, %15, %cst_14 {dimension_numbers = #tpu.dot_dimension_numbers<[1], [0], [0], [1], [0, 0, 1, 1], [], []>} : vector<8x128xf32>, vector<128x128xf32>, vector<8x128xf32> -> vector<8x128xf32>
    %17 = arith.addf %14, %16 : vector<8x128xf32>
    %18 = math.tanh %17 : vector<8x128xf32>
    %c1_i32 = arith.constant 1 : i32
    %c8_i32_15 = arith.constant 8 : i32
    %19 = arith.muli %c1_i32, %c8_i32_15 : i32
    %20 = tpu.assume_multiple %19, 8 : i32
    %21 = arith.index_cast %20 : i32 to index
    %c0_16 = arith.constant 0 : index
    %22 = vector.load %arg11[%21, %c0_16] : memref<64x128xf32, #tpu.memory_space<vmem>>, vector<8x128xf32>
    %c0_17 = arith.constant 0 : index
    %c0_18 = arith.constant 0 : index
    %23 = vector.load %arg3[%c0_17, %c0_18] : memref<128x128xf32, #tpu.memory_space<vmem>>, vector<128x128xf32>
    %cst_19 = arith.constant dense<0.000000e+00> : vector<8x128xf32>
    %24 = tpu.matmul %18, %23, %cst_19 {dimension_numbers = #tpu.dot_dimension_numbers<[1], [0], [0], [1], [0, 0, 1, 1], [], []>} : vector<8x128xf32>, vector<128x128xf32>, vector<8x128xf32> -> vector<8x128xf32>
    %25 = arith.addf %22, %24 : vector<8x128xf32>
    %26 = math.tanh %25 : vector<8x128xf32>
    %c2_i32 = arith.constant 2 : i32
    %c8_i32_20 = arith.constant 8 : i32
    %27 = arith.muli %c2_i32, %c8_i32_20 : i32
    %28 = tpu.assume_multiple %27, 8 : i32
    %29 = arith.index_cast %28 : i32 to index
    %c0_21 = arith.constant 0 : index
    %30 = vector.load %arg11[%29, %c0_21] : memref<64x128xf32, #tpu.memory_space<vmem>>, vector<8x128xf32>
    %c0_22 = arith.constant 0 : index
    %c0_23 = arith.constant 0 : index
    %31 = vector.load %arg3[%c0_22, %c0_23] : memref<128x128xf32, #tpu.memory_space<vmem>>, vector<128x128xf32>
    %cst_24 = arith.constant dense<0.000000e+00> : vector<8x128xf32>
    %32 = tpu.matmul %26, %31, %cst_24 {dimension_numbers = #tpu.dot_dimension_numbers<[1], [0], [0], [1], [0, 0, 1, 1], [], []>} : vector<8x128xf32>, vector<128x128xf32>, vector<8x128xf32> -> vector<8x128xf32>
    %33 = arith.addf %30, %32 : vector<8x128xf32>
    %34 = math.tanh %33 : vector<8x128xf32>
    %c3_i32 = arith.constant 3 : i32
    %c8_i32_25 = arith.constant 8 : i32
    %35 = arith.muli %c3_i32, %c8_i32_25 : i32
    %36 = tpu.assume_multiple %35, 8 : i32
    %37 = arith.index_cast %36 : i32 to index
    %c0_26 = arith.constant 0 : index
    %38 = vector.load %arg11[%37, %c0_26] : memref<64x128xf32, #tpu.memory_space<vmem>>, vector<8x128xf32>
    %c0_27 = arith.constant 0 : index
    %c0_28 = arith.constant 0 : index
    %39 = vector.load %arg3[%c0_27, %c0_28] : memref<128x128xf32, #tpu.memory_space<vmem>>, vector<128x128xf32>
    %cst_29 = arith.constant dense<0.000000e+00> : vector<8x128xf32>
    %40 = tpu.matmul %34, %39, %cst_29 {dimension_numbers = #tpu.dot_dimension_numbers<[1], [0], [0], [1], [0, 0, 1, 1], [], []>} : vector<8x128xf32>, vector<128x128xf32>, vector<8x128xf32> -> vector<8x128xf32>
    %41 = arith.addf %38, %40 : vector<8x128xf32>
    %42 = math.tanh %41 : vector<8x128xf32>
    %c4_i32 = arith.constant 4 : i32
    %c8_i32_30 = arith.constant 8 : i32
    %43 = arith.muli %c4_i32, %c8_i32_30 : i32
    %44 = tpu.assume_multiple %43, 8 : i32
    %45 = arith.index_cast %44 : i32 to index
    %c0_31 = arith.constant 0 : index
    %46 = vector.load %arg11[%45, %c0_31] : memref<64x128xf32, #tpu.memory_space<vmem>>, vector<8x128xf32>
    %c0_32 = arith.constant 0 : index
    %c0_33 = arith.constant 0 : index
    %47 = vector.load %arg3[%c0_32, %c0_33] : memref<128x128xf32, #tpu.memory_space<vmem>>, vector<128x128xf32>
    %cst_34 = arith.constant dense<0.000000e+00> : vector<8x128xf32>
    %48 = tpu.matmul %42, %47, %cst_34 {dimension_numbers = #tpu.dot_dimension_numbers<[1], [0], [0], [1], [0, 0, 1, 1], [], []>} : vector<8x128xf32>, vector<128x128xf32>, vector<8x128xf32> -> vector<8x128xf32>
    %49 = arith.addf %46, %48 : vector<8x128xf32>
    %50 = math.tanh %49 : vector<8x128xf32>
    %c5_i32 = arith.constant 5 : i32
    %c8_i32_35 = arith.constant 8 : i32
    %51 = arith.muli %c5_i32, %c8_i32_35 : i32
    %52 = tpu.assume_multiple %51, 8 : i32
    %53 = arith.index_cast %52 : i32 to index
    %c0_36 = arith.constant 0 : index
    %54 = vector.load %arg11[%53, %c0_36] : memref<64x128xf32, #tpu.memory_space<vmem>>, vector<8x128xf32>
    %c0_37 = arith.constant 0 : index
    %c0_38 = arith.constant 0 : index
    %55 = vector.load %arg3[%c0_37, %c0_38] : memref<128x128xf32, #tpu.memory_space<vmem>>, vector<128x128xf32>
    %cst_39 = arith.constant dense<0.000000e+00> : vector<8x128xf32>
    %56 = tpu.matmul %50, %55, %cst_39 {dimension_numbers = #tpu.dot_dimension_numbers<[1], [0], [0], [1], [0, 0, 1, 1], [], []>} : vector<8x128xf32>, vector<128x128xf32>, vector<8x128xf32> -> vector<8x128xf32>
    %57 = arith.addf %54, %56 : vector<8x128xf32>
    %58 = math.tanh %57 : vector<8x128xf32>
    %c6_i32 = arith.constant 6 : i32
    %c8_i32_40 = arith.constant 8 : i32
    %59 = arith.muli %c6_i32, %c8_i32_40 : i32
    %60 = tpu.assume_multiple %59, 8 : i32
    %61 = arith.index_cast %60 : i32 to index
    %c0_41 = arith.constant 0 : index
    %62 = vector.load %arg11[%61, %c0_41] : memref<64x128xf32, #tpu.memory_space<vmem>>, vector<8x128xf32>
    %c0_42 = arith.constant 0 : index
    %c0_43 = arith.constant 0 : index
    %63 = vector.load %arg3[%c0_42, %c0_43] : memref<128x128xf32, #tpu.memory_space<vmem>>, vector<128x128xf32>
    %cst_44 = arith.constant dense<0.000000e+00> : vector<8x128xf32>
    %64 = tpu.matmul %58, %63, %cst_44 {dimension_numbers = #tpu.dot_dimension_numbers<[1], [0], [0], [1], [0, 0, 1, 1], [], []>} : vector<8x128xf32>, vector<128x128xf32>, vector<8x128xf32> -> vector<8x128xf32>
    %65 = arith.addf %62, %64 : vector<8x128xf32>
    %66 = math.tanh %65 : vector<8x128xf32>
    %c7_i32 = arith.constant 7 : i32
    %c8_i32_45 = arith.constant 8 : i32
    %67 = arith.muli %c7_i32, %c8_i32_45 : i32
    %68 = tpu.assume_multiple %67, 8 : i32
    %69 = arith.index_cast %68 : i32 to index
    %c0_46 = arith.constant 0 : index
    %70 = vector.load %arg11[%69, %c0_46] : memref<64x128xf32, #tpu.memory_space<vmem>>, vector<8x128xf32>
    %c0_47 = arith.constant 0 : index
    %c0_48 = arith.constant 0 : index
    %71 = vector.load %arg3[%c0_47, %c0_48] : memref<128x128xf32, #tpu.memory_space<vmem>>, vector<128x128xf32>
    %cst_49 = arith.constant dense<0.000000e+00> : vector<8x128xf32>
    %72 = tpu.matmul %66, %71, %cst_49 {dimension_numbers = #tpu.dot_dimension_numbers<[1], [0], [0], [1], [0, 0, 1, 1], [], []>} : vector<8x128xf32>, vector<128x128xf32>, vector<8x128xf32> -> vector<8x128xf32>
    %73 = arith.addf %70, %72 : vector<8x128xf32>
    %74 = math.tanh %73 : vector<8x128xf32>
    %c8_i32_50 = arith.constant 8 : i32
    %c0_51 = arith.constant 0 : index
    %c0_52 = arith.constant 0 : index
    %75 = vector.load %arg10[%c0_51, %c0_52] : memref<8x128xf32, #tpu.memory_space<vmem>>, vector<8x128xf32>
    tpu.vector_store %arg10[%c0_51, %c0_52], %74 {strides = array<i32>} : memref<8x128xf32, #tpu.memory_space<vmem>>, vector<8x128xf32>,
    %c0_i32_53 = arith.constant 0 : i32
    %76 = arith.cmpi eq, %arg0, %c0_i32_53 : i32
    %77 = arith.extui %76 : i1 to i32
    %c0_i32_54 = arith.constant 0 : i32
    %78 = arith.cmpi ne, %77, %c0_i32_54 : i32
    scf.if %78 {
      %c0_55 = arith.constant 0 : index
      %c0_56 = arith.constant 0 : index
      %79 = vector.load %arg10[%c0_55, %c0_56] : memref<8x128xf32, #tpu.memory_space<vmem>>, vector<8x128xf32>
      %c0_57 = arith.constant 0 : index
      %c0_58 = arith.constant 0 : index
      %80 = vector.load %arg5[%c0_57, %c0_58] : memref<128x128xf32, #tpu.memory_space<vmem>>, vector<128x128xf32>
      %cst_59 = arith.constant dense<0.000000e+00> : vector<8x128xf32>
      %81 = tpu.matmul %79, %80, %cst_59 {dimension_numbers = #tpu.dot_dimension_numbers<[1], [0], [0], [1], [0, 0, 1, 1], [], []>} : vector<8x128xf32>, vector<128x128xf32>, vector<8x128xf32> -> vector<8x128xf32>
      %c0_60 = arith.constant 0 : index
      %c0_61 = arith.constant 0 : index
      %82 = vector.load %arg6[%c0_60, %c0_61] : memref<1x128xf32, #tpu.memory_space<vmem>>, vector<1x128xf32>
      %83 = vector.broadcast %82 : vector<1x128xf32> to vector<8x128xf32>
      %84 = arith.addf %81, %83 : vector<8x128xf32>
      %85 = math.tanh %84 : vector<8x128xf32>
      %c0_62 = arith.constant 0 : index
      %c0_63 = arith.constant 0 : index
      %86 = vector.load %arg7[%c0_62, %c0_63] : memref<128x128xf32, #tpu.memory_space<vmem>>, vector<128x128xf32>
      %cst_64 = arith.constant dense<0.000000e+00> : vector<8x128xf32>
      %87 = tpu.matmul %85, %86, %cst_64 {dimension_numbers = #tpu.dot_dimension_numbers<[1], [0], [0], [1], [0, 0, 1, 1], [], []>} : vector<8x128xf32>, vector<128x128xf32>, vector<8x128xf32> -> vector<8x128xf32>
      %c0_65 = arith.constant 0 : index
      %c0_66 = arith.constant 0 : index
      %88 = vector.load %arg8[%c0_65, %c0_66] : memref<1x128xf32, #tpu.memory_space<vmem>>, vector<1x128xf32>
      %89 = vector.broadcast %88 : vector<1x128xf32> to vector<8x128xf32>
      %90 = arith.addf %87, %89 : vector<8x128xf32>
      %91 = tpu.iota {dimensions = array<i32: 1>} : vector<8x128xi32>
      %c5_i32_67 = arith.constant 5 : i32
      %92 = vector.broadcast %c5_i32_67 : i32 to vector<8x128xi32>
      %93 = arith.cmpi slt, %91, %92 : vector<8x128xi32>
      %cst_68 = arith.constant -1.000000e+30 : f32
      %94 = vector.broadcast %cst_68 : f32 to vector<8x128xf32>
      %95 = arith.select %93, %90, %94 : vector<8x128xi1>, vector<8x128xf32>
      %cst_69 = arith.constant dense<0xFF800000> : vector<8xf32>
      %96 = vector.multi_reduction <maximumf>, %95, %cst_69 [1] : vector<8x128xf32> to vector<8xf32>
      %97 = vector.shape_cast %96 : vector<8xf32> to vector<8x1xf32>
      %98 = vector.broadcast %97 : vector<8x1xf32> to vector<8x128xf32>
      %99 = arith.subf %95, %98 : vector<8x128xf32>
      %100 = math.exp %99 : vector<8x128xf32>
      %cst_70 = arith.constant dense<0.000000e+00> : vector<8xf32>
      %101 = vector.multi_reduction <add>, %100, %cst_70 [1] : vector<8x128xf32> to vector<8xf32>
      %102 = vector.shape_cast %101 : vector<8xf32> to vector<8x1xf32>
      %103 = math.log %102 : vector<8x1xf32>
      %104 = vector.broadcast %103 : vector<8x1xf32> to vector<8x128xf32>
      %105 = arith.subf %99, %104 : vector<8x128xf32>
      %c0_71 = arith.constant 0 : index
      %c0_72 = arith.constant 0 : index
      %106 = vector.load %arg9[%c0_71, %c0_72] : memref<8x128xf32, #tpu.memory_space<vmem>>, vector<8x128xf32>
      tpu.vector_store %arg9[%c0_71, %c0_72], %105 {strides = array<i32>} : memref<8x128xf32, #tpu.memory_space<vmem>>, vector<8x128xf32>,
    } else {
    }
    return
  }
  func.func @transform_0(%arg0: i32) -> (i32, i32) {
    %c0_i32 = arith.constant 0 : i32
    %c0_i32_0 = arith.constant 0 : i32
    return %arg0, %c0_i32 : i32, i32
  }
  func.func @transform_1(%arg0: i32) -> (i32, i32) {
    %c0_i32 = arith.constant 0 : i32
    %c0_i32_0 = arith.constant 0 : i32
    %c0_i32_1 = arith.constant 0 : i32
    return %c0_i32, %c0_i32_0 : i32, i32
  }
  func.func @transform_2(%arg0: i32) -> (i32, i32) {
    %c0_i32 = arith.constant 0 : i32
    %c0_i32_0 = arith.constant 0 : i32
    %c0_i32_1 = arith.constant 0 : i32
    return %c0_i32, %c0_i32_0 : i32, i32
  }
  func.func @transform_3(%arg0: i32) -> (i32, i32) {
    %c0_i32 = arith.constant 0 : i32
    %c0_i32_0 = arith.constant 0 : i32
    %c0_i32_1 = arith.constant 0 : i32
    return %c0_i32, %c0_i32_0 : i32, i32
  }
  func.func @transform_4(%arg0: i32) -> (i32, i32) {
    %c0_i32 = arith.constant 0 : i32
    %c0_i32_0 = arith.constant 0 : i32
    %c0_i32_1 = arith.constant 0 : i32
    return %c0_i32, %c0_i32_0 : i32, i32
  }
  func.func @transform_5(%arg0: i32) -> (i32, i32) {
    %c0_i32 = arith.constant 0 : i32
    %c0_i32_0 = arith.constant 0 : i32
    %c0_i32_1 = arith.constant 0 : i32
    return %c0_i32, %c0_i32_0 : i32, i32
  }
  func.func @transform_6(%arg0: i32) -> (i32, i32) {
    %c0_i32 = arith.constant 0 : i32
    %c0_i32_0 = arith.constant 0 : i32
    %c0_i32_1 = arith.constant 0 : i32
    return %c0_i32, %c0_i32_0 : i32, i32
  }
  func.func @transform_7(%arg0: i32) -> (i32, i32) {
    %c0_i32 = arith.constant 0 : i32
    %c0_i32_0 = arith.constant 0 : i32
    %c0_i32_1 = arith.constant 0 : i32
    return %c0_i32, %c0_i32_0 : i32, i32
  }
  func.func @transform_8(%arg0: i32) -> (i32, i32) {
    %c0_i32 = arith.constant 0 : i32
    %c0_i32_0 = arith.constant 0 : i32
    %c0_i32_1 = arith.constant 0 : i32
    return %c0_i32, %c0_i32_0 : i32, i32
  }
}

</mosaic_0001>

<bundles_post_ra>
// kernel: rnn_forward.1
= control target key start
LH: loop header
LB: loop body
LE: loop exit
PB: predicated region body
PF: predicated region fallthrough
CT: control target
= control target key end

     0   :  { %v1589_v0 = vmov 0.0   ;;  %vm1590_vm0 = vmmov 0   ;;  %vm51_vm1 = vcmask 130048   ;;  %s2196_s2 = inlined_call_operand.vmem [shape: f32[128,128], index: 2, kind: input, shape index: {}]   ;;  %s2197_s1 = inlined_call_operand.vmem [shape: f32[16,128], index: 1, kind: input, shape index: {}]   ;;  %s2198_s0 = inlined_call_operand.vmem [shape: f32[64,16], index: 0, kind: input, shape index: {}]   ;;  %s2199_s3 = inlined_call_operand.vmem [shape: f32[1,128], index: 3, kind: input, shape index: {}]   ;;  %s2200_s4 = inlined_call_operand.vmem [shape: f32[128,128], index: 4, kind: input, shape index: {}]   ;;  %s2201_s6 = inlined_call_operand.vmem [shape: f32[128,128], index: 6, kind: input, shape index: {}]   ;;  %s2202_s5 = inlined_call_operand.vmem [shape: f32[1,128], index: 5, kind: input, shape index: {}]   ;;  %s2203_s7 = inlined_call_operand.vmem [shape: f32[1,128], index: 7, kind: input, shape index: {}]   ;;  %s2204_s8 = inlined_call_operand.vmem [shape: f32[8,128], index: 8, kind: output, shape index: {}]  }
   0x1   :  { %1215 = vmatprep.subr.mxu1 %v1589_v0  ;;  %v1640_v1 = vld [vmem:[%s2196_s2 + $0x78] sm:$0xff]  ;;  %v1645_v2 = vld [vmem:[%s2196_s2 + $0x70] sm:$0xff]  ;;  %1247 = vmatprep.mubr.msk.f32.mxu1 %vm1590_vm0, %v1589_v0  ;;  %v1654_v3 = vld [vmem:[%s2196_s2 + $0x68] sm:$0xff] }
   0x2   :  { %1216 = vmatpush3.msra.mxu1 %v1640_v1  ;;  %v43_v4 = vld [vmem:[%s2197_s1 + $0x8] sm:$0xff]  ;;  %v1664_v5 = vld [vmem:[%s2196_s2 + $0x60] sm:$0xff]  ;;  %v1677_v8 = vld [vmem:[%s2196_s2 + $0x58] sm:$0xff] }
   0x3   :  { %1217 = vmatprep.subr.mxu1 %v1589_v0  ;;  %1199 = vmatprep.subr.mxu0 %v43_v4  ;;  %v42_v6 = vld [vmem:[%s2197_s1] sm:$0xff]  ;;  %v35_v9 = vld [vmem:[%s2198_s0 + $0x8] sm:$0xff]  ;;  %v1687_v10 = vld [vmem:[%s2196_s2 + $0x50] sm:$0xff] }
   0x4   :  { %1218 = vmatpush3.msra.mxu1 %v1645_v2  ;;  %1200 = vmatpush3.msra.mxu0 %v43_v4  ;;  %v34_v7 = vld [vmem:[%s2198_s0] sm:$0xff]  ;;  %v1696_v11 = vld [vmem:[%s2196_s2 + $0x48] sm:$0xff]  ;;  %v1714_v13 = vld [vmem:[%s2196_s2 + $0x38] sm:$0xff] }
   0x5   :  { %1219 = vmatprep.subr.mxu1 %v1589_v0  ;;  %1201 = vmatprep.subr.mxu0 %v42_v6  ;;  %v1705_v12 = vld [vmem:[%s2196_s2 + $0x40] sm:$0xff]  ;;  %v1723_v14 = vld [vmem:[%s2196_s2 + $0x30] sm:$0xff]  ;;  %v1732_v15 = vld [vmem:[%s2196_s2 + $0x28] sm:$0xff] }
   0x6   :  { %1220 = vmatpush3.msra.mxu1 %v1654_v3  ;;  %1202 = vmatpush3.msra.mxu0 %v42_v6  ;;  %v1741_v16 = vld [vmem:[%s2196_s2 + $0x20] sm:$0xff]  ;;  %v1750_v17 = vld [vmem:[%s2196_s2 + $0x18] sm:$0xff]  ;;  %v1759_v18 = vld [vmem:[%s2196_s2 + $0x10] sm:$0xff] }
   0x7   :  { %1221 = vmatprep.subr.mxu1 %v1589_v0  ;;  %1203 = vmatprep.mubr.msk.f32.mxu0 %vm51_vm1, %v34_v7  ;;  %v1768_v19 = vld [vmem:[%s2196_s2 + $0x8] sm:$0xff]  ;;  %v1777_v20 = vld [vmem:[%s2196_s2] sm:$0xff]  ;;  %v36_v21 = vld [vmem:[%s2198_s0 + $0x10] sm:$0xff] }
   0x8   :  { %1222 = vmatpush3.msra.mxu1 %v1664_v5  ;;  %1204 = vmatmul.mubr.msk.f32.vlgmr.msra.gmra.mxu0 %vm51_vm1, %v35_v9  ;;  %v37_v22 = vld [vmem:[%s2198_s0 + $0x18] sm:$0xff]  ;;  %v38_v23 = vld [vmem:[%s2198_s0 + $0x20] sm:$0xff]  ;;  %v39_v24 = vld [vmem:[%s2198_s0 + $0x28] sm:$0xff] }
   0x9   :  { %1223 = vmatprep.subr.mxu1 %v1589_v0  ;;  %1250 = vmatprep.subr.mxu0 %v1589_v0  ;;  %v40_v25 = vld [vmem:[%s2198_s0 + $0x30] sm:$0xff]  ;;  %v41_v26 = vld [vmem:[%s2198_s0 + $0x38] sm:$0xff]  ;;  %v1862_v28 = vld [vmem:[%s2199_s3] ss:$0 sm:$0xff] }
   0xa   :  { %1224 = vmatpush3.msra.mxu1 %v1677_v8  ;;  %1251 = vmatpush3.msra.mxu0 %v1640_v1  ;;  %v816_v4 = vld [vmem:[%s2200_s4 + $0x70] sm:$0xff]  ;;  %v814_v6 = vld [vmem:[%s2200_s4 + $0x60] sm:$0xff]  ;;  %v813_v7 = vld [vmem:[%s2200_s4 + $0x58] sm:$0xff] }
   0xb   :  { %1225 = vmatprep.subr.mxu1 %v1589_v0  ;;  %1252 = vmatprep.subr.mxu0 %v1589_v0  ;;  %v811_v9 = vld [vmem:[%s2200_s4 + $0x48] sm:$0xff] }
   0xc   :  { %1226 = vmatpush3.msra.mxu1 %v1687_v10  ;;  %1253 = vmatpush3.msra.mxu0 %v1645_v2 }
   0xd   :  { %1227 = vmatprep.subr.mxu1 %v1589_v0  ;;  %1254 = vmatprep.subr.mxu0 %v1589_v0 }
   0xe   :  { %1228 = vmatpush3.msra.mxu1 %v1696_v11  ;;  %1255 = vmatpush3.msra.mxu0 %v1654_v3 }
   0xf   :  { %1229 = vmatprep.subr.mxu1 %v1589_v0  ;;  %1256 = vmatprep.subr.mxu0 %v1589_v0 }
  0x10   :  { %1230 = vmatpush3.msra.mxu1 %v1705_v12  ;;  %1257 = vmatpush3.msra.mxu0 %v1664_v5 }
  0x11   :  { %1231 = vmatprep.subr.mxu1 %v1589_v0  ;;  %1258 = vmatprep.subr.mxu0 %v1589_v0 }
  0x12   :  { %1232 = vmatpush3.msra.mxu1 %v1714_v13  ;;  %1259 = vmatpush3.msra.mxu0 %v1677_v8 }
  0x13   :  { %1233 = vmatprep.subr.mxu1 %v1589_v0  ;;  %1260 = vmatprep.subr.mxu0 %v1589_v0 }
  0x14   :  { %1234 = vmatpush3.msra.mxu1 %v1723_v14  ;;  %1261 = vmatpush3.msra.mxu0 %v1687_v10 }
  0x15   :  { %1235 = vmatprep.subr.mxu1 %v1589_v0  ;;  %1262 = vmatprep.subr.mxu0 %v1589_v0 }
  0x16   :  { %1236 = vmatpush3.msra.mxu1 %v1732_v15  ;;  %1263 = vmatpush3.msra.mxu0 %v1696_v11 }
  0x17   :  { %1237 = vmatprep.subr.mxu1 %v1589_v0  ;;  %1264 = vmatprep.subr.mxu0 %v1589_v0 }
  0x18   :  { %1238 = vmatpush3.msra.mxu1 %v1741_v16  ;;  %1265 = vmatpush3.msra.mxu0 %v1705_v12 }
  0x19   :  { %1239 = vmatprep.subr.mxu1 %v1589_v0  ;;  %1266 = vmatprep.subr.mxu0 %v1589_v0 }
  0x1a   :  { %1240 = vmatpush3.msra.mxu1 %v1750_v17  ;;  %1267 = vmatpush3.msra.mxu0 %v1714_v13 }
  0x1b   :  { %1241 = vmatprep.subr.mxu1 %v1589_v0  ;;  %1268 = vmatprep.subr.mxu0 %v1589_v0 }
  0x1c   :  { %1242 = vmatpush3.msra.mxu1 %v1759_v18  ;;  %1269 = vmatpush3.msra.mxu0 %v1723_v14 }
  0x1d   :  { %1243 = vmatprep.subr.mxu1 %v1589_v0  ;;  %1270 = vmatprep.subr.mxu0 %v1589_v0 }
  0x1e   :  { %1244 = vmatpush3.msra.mxu1 %v1768_v19  ;;  %1271 = vmatpush3.msra.mxu0 %v1732_v15 }
  0x1f   :  { %1245 = vmatprep.subr.mxu1 %v1589_v0  ;;  %1272 = vmatprep.subr.mxu0 %v1589_v0 }
  0x20   :  { %1246 = vmatpush3.msra.mxu1 %v1777_v20  ;;  %1273 = vmatpush3.msra.mxu0 %v1741_v16 }
  0x21   :  { %1248 = vmatmul.mubr.f32.vlgmr.msra.gmra.mxu1 %v1589_v0  ;;  %1285 = vmatprep.subr.mxu1 %v1589_v0 }
  0x22   :  { %1274 = vmatprep.subr.mxu0 %v1589_v0  ;;  %1286 = vmatpush3.msra.mxu1 %v1640_v1 }
  0x23   :  { %1275 = vmatpush3.msra.mxu0 %v1750_v17  ;;  %1287 = vmatprep.subr.mxu1 %v1589_v0 }
  0x24   :  { %1276 = vmatprep.subr.mxu0 %v1589_v0  ;;  %1288 = vmatpush3.msra.mxu1 %v1645_v2 }
  0x25   :  { %1277 = vmatpush3.msra.mxu0 %v1759_v18  ;;  %1289 = vmatprep.subr.mxu1 %v1589_v0 }
  0x26   :  { %1278 = vmatprep.subr.mxu0 %v1589_v0  ;;  %1290 = vmatpush3.msra.mxu1 %v1654_v3 }
  0x27   :  { %1279 = vmatpush3.msra.mxu0 %v1768_v19  ;;  %1291 = vmatprep.subr.mxu1 %v1589_v0 }
  0x28   :  { %1280 = vmatprep.subr.mxu0 %v1589_v0  ;;  %1292 = vmatpush3.msra.mxu1 %v1664_v5 }
  0x29   :  { %1281 = vmatpush3.msra.mxu0 %v1777_v20  ;;  %1293 = vmatprep.subr.mxu1 %v1589_v0 }
  0x2a   :  { %1294 = vmatpush3.msra.mxu1 %v1677_v8  ;;  %1317 = vmatprep.mubr.msk.f32.mxu1 %vm1590_vm0, %v1589_v0 }
  0x2b   :  { %1295 = vmatprep.subr.mxu1 %v1589_v0  ;;  %1320 = vmatprep.subr.mxu0 %v1589_v0 }
  0x2c   :  { %1296 = vmatpush3.msra.mxu1 %v1687_v10  ;;  %1206 = vmatprep.mubr.msk.f32.mxu0 %vm51_vm1, %v36_v21  ;;  %v804_v21 = vld [vmem:[%s2200_s4 + $0x10] sm:$0xff] }
  0x2d   :  { %1297 = vmatprep.subr.mxu1 %v1589_v0  ;;  %1207 = vmatmul.mubr.msk.f32.gmra.mxu0 %vm51_vm1, %v37_v22  ;;  %v803_v22 = vld [vmem:[%s2200_s4 + $0x8] sm:$0xff] }
  0x2e   :  { %1298 = vmatpush3.msra.mxu1 %v1696_v11  ;;  %1209 = vmatprep.mubr.msk.f32.mxu0 %vm51_vm1, %v38_v23  ;;  %v802_v23 = vld [vmem:[%s2200_s4] sm:$0xff] }
  0x2f   :  { %1299 = vmatprep.subr.mxu1 %v1589_v0 }
  0x30   :  { %1300 = vmatpush3.msra.mxu1 %v1705_v12 }
  0x31   :  { %1301 = vmatprep.subr.mxu1 %v1589_v0  ;;  %1210 = vmatmul.mubr.msk.f32.gmra.mxu0 %vm51_vm1, %v39_v24  ;;  %v911_v24 = vld [vmem:[%s2201_s6 + $0x78] sm:$0xff] }
  0x32   :  { %1302 = vmatpush3.msra.mxu1 %v1714_v13  ;;  %1212 = vmatprep.mubr.msk.f32.mxu0 %vm51_vm1, %v40_v25  ;;  %v910_v25 = vld [vmem:[%s2201_s6 + $0x70] sm:$0xff] }
  0x33   :  { %1303 = vmatprep.subr.mxu1 %v1589_v0 }
  0x34   :  { %1304 = vmatpush3.msra.mxu1 %v1723_v14 }
  0x35   :  { %1305 = vmatprep.subr.mxu1 %v1589_v0  ;;  %1213 = vmatmul.mubr.msk.f32.gmra.mxu0 %vm51_vm1, %v41_v26  ;;  %v909_v26 = vld [vmem:[%s2201_s6 + $0x68] sm:$0xff] }
  0x36   :  { %1306 = vmatpush3.msra.mxu1 %v1732_v15  ;;  %1282 = vmatprep.mubr.msk.f32.mxu0 %vm1590_vm0, %v1589_v0 }
  0x37   :  { %1307 = vmatprep.subr.mxu1 %v1589_v0 }
  0x38   :  { %1308 = vmatpush3.msra.mxu1 %v1741_v16 }
  0x39   :  { %1309 = vmatprep.subr.mxu1 %v1589_v0 }
  0x3a   :  { %1310 = vmatpush3.msra.mxu1 %v1750_v17 }
  0x3b   :  { %1311 = vmatprep.subr.mxu1 %v1589_v0 }
  0x3c   :  { %1312 = vmatpush3.msra.mxu1 %v1759_v18 }
  0x3d   :  { %1313 = vmatprep.subr.mxu1 %v1589_v0 }
  0x3e   :  { %1314 = vmatpush3.msra.mxu1 %v1768_v19 }
  0x3f   :  { %1315 = vmatprep.subr.mxu1 %v1589_v0 }
  0x40   :  { %1316 = vmatpush3.msra.mxu1 %v1777_v20 }
  0x41   :  { %1355 = vmatprep.subr.mxu1 %v1589_v0 }
  0xc8   :  { %v1205_v27 = vpop.f32.mrf.mxu0 }
  0xc9   :  { %v148_v41 = vadd.f32 %v1205_v27, %v1862_v28  ;;  %v908_v27 = vld [vmem:[%s2201_s6 + $0x60] sm:$0xff] }
  0xca   :  { %v142_v29 = vpop.f32.mrf.mxu0 }
  0xcb   :  { %v143_v30 = vadd.f32 %v1862_v28, %v142_v29  ;;  %v907_v29 = vld [vmem:[%s2201_s6 + $0x58] sm:$0xff] }
  0xe1   :  { %v273_v31 = vpop.f32.mrf.mxu1 }
  0xe2   :  { %v277_v32 = vadd.f32 %v273_v31, %v143_v30  ;;  %v906_v30 = vld [vmem:[%s2201_s6 + $0x50] sm:$0xff]  ;;  %v905_v31 = vld [vmem:[%s2201_s6 + $0x48] sm:$0xff] }
  0xe3   :  { %v1249_v33 = vpop.f32.mrf.mxu1 }
  0xe4   :  { %1567 = vtanh.f32 %v277_v32 }
  0xed   :  { %v1899_v35 = vpop.f32.mrf.mxu0 }
  0xee   :  { %v158_v51 = vadd.f32 %v1899_v35, %v1862_v28 }
  0xef   :  { %v152_v36 = vpop.f32.mrf.mxu0 }
  0xf0   :  { %v153_v46 = vadd.f32 %v1862_v28, %v152_v36 }
  0xf1   :  { %v1568_v34 = vpop.eup %1567  ;;  %v1901_v37 = vpop.f32.mrf.mxu0 }
  0xf2   :  { %1283 = vmatmul.mubr.f32.vlgmr.msra.gmra.mxu0 %v1568_v34  ;;  %v168_v61 = vadd.f32 %v1901_v37, %v1862_v28  ;;  %v904_v37 = vld [vmem:[%s2201_s6 + $0x40] sm:$0xff] }
  0xf3   :  { %1321 = vmatpush3.msra.mxu0 %v1640_v1  ;;  %1352 = vmatprep.mubr.msk.f32.mxu0 %vm1590_vm0, %v1589_v0  ;;  %v1903_v38 = vpop.f32.mrf.mxu0 }
  0xf4   :  { %1322 = vmatprep.subr.mxu0 %v1589_v0  ;;  %v163_v56 = vadd.f32 %v1862_v28, %v1903_v38  ;;  %v903_v38 = vld [vmem:[%s2201_s6 + $0x38] sm:$0xff] }
  0xf5   :  { %1323 = vmatpush3.msra.mxu0 %v1645_v2  ;;  %v1905_v39 = vpop.f32.mrf.mxu0 }
  0xf6   :  { %1324 = vmatprep.subr.mxu0 %v1589_v0  ;;  %v178_v32 = vadd.f32 %v1905_v39, %v1862_v28  ;;  %v901_v39 = vld [vmem:[%s2201_s6 + $0x28] sm:$0xff] }
  0xf7   :  { %1325 = vmatpush3.msra.mxu0 %v1654_v3  ;;  %v1907_v40 = vpop.f32.mrf.mxu0 }
  0xf8   :  { %1326 = vmatprep.subr.mxu0 %v1589_v0 }
  0xf9   :  { %1327 = vmatpush3.msra.mxu0 %v1664_v5 }
  0xfa   :  { %1328 = vmatprep.subr.mxu0 %v1589_v0 }
  0xfb   :  { %1329 = vmatpush3.msra.mxu0 %v1677_v8 }
  0xfc   :  { %1330 = vmatprep.subr.mxu0 %v1589_v0 }
  0xfd   :  { %1331 = vmatpush3.msra.mxu0 %v1687_v10 }
  0xfe   :  { %1332 = vmatprep.subr.mxu0 %v1589_v0 }
  0xff   :  { %1333 = vmatpush3.msra.mxu0 %v1696_v11 }
 0x100   :  { %1334 = vmatprep.subr.mxu0 %v1589_v0 }
 0x101   :  { %1335 = vmatpush3.msra.mxu0 %v1705_v12 }
 0x102   :  { %1336 = vmatprep.subr.mxu0 %v1589_v0 }
 0x103   :  { %1337 = vmatpush3.msra.mxu0 %v1714_v13 }
 0x104   :  { %1338 = vmatprep.subr.mxu0 %v1589_v0 }
 0x105   :  { %1339 = vmatpush3.msra.mxu0 %v1723_v14 }
 0x106   :  { %1340 = vmatprep.subr.mxu0 %v1589_v0 }
 0x107   :  { %1341 = vmatpush3.msra.mxu0 %v1732_v15 }
 0x108   :  { %1342 = vmatprep.subr.mxu0 %v1589_v0 }
 0x109   :  { %1343 = vmatpush3.msra.mxu0 %v1741_v16 }
 0x10a   :  { %1344 = vmatprep.subr.mxu0 %v1589_v0 }
 0x10b   :  { %1345 = vmatpush3.msra.mxu0 %v1750_v17 }
 0x10c   :  { %1346 = vmatprep.subr.mxu0 %v1589_v0 }
 0x10d   :  { %1347 = vmatpush3.msra.mxu0 %v1759_v18 }
 0x10e   :  { %1348 = vmatprep.subr.mxu0 %v1589_v0 }
 0x10f   :  { %1349 = vmatpush3.msra.mxu0 %v1768_v19 }
 0x110   :  { %1350 = vmatprep.subr.mxu0 %v1589_v0 }
 0x111   :  { %1351 = vmatpush3.msra.mxu0 %v1777_v20 }
 0x112   :  { %1390 = vmatprep.subr.mxu0 %v1589_v0 }
 0x1b2   :  { %v347_v42 = vpop.f32.mrf.mxu0 }
 0x1b3   :  { %v351_v43 = vadd.f32 %v347_v42, %v148_v41  ;;  %v899_v41 = vld [vmem:[%s2201_s6 + $0x18] sm:$0xff]  ;;  %v898_v42 = vld [vmem:[%s2201_s6 + $0x10] sm:$0xff] }
 0x1b4   :  { %v1284_v44 = vpop.f32.mrf.mxu0 }
 0x1b5   :  { %1569 = vtanh.f32 %v351_v43  ;;  %v897_v43 = vld [vmem:[%s2201_s6 + $0x8] sm:$0xff]  ;;  %v896_v44 = vld [vmem:[%s2201_s6] sm:$0xff] }
 0x1c2   :  { %v1570_v45 = vpop.eup %1569 }
 0x1c3   :  { %1318 = vmatmul.mubr.f32.vlgmr.msra.gmra.mxu1 %v1570_v45  ;;  %v1017_v45 = vld [vmem:[%s2202_s5] ss:$0 sm:$0xff] }
 0x1c4   :  { %1356 = vmatpush3.msra.mxu1 %v1640_v1  ;;  %1387 = vmatprep.mubr.msk.f32.mxu1 %vm1590_vm0, %v1589_v0 }
 0x1c5   :  { %1357 = vmatprep.subr.mxu1 %v1589_v0 }
 0x1c6   :  { %1358 = vmatpush3.msra.mxu1 %v1645_v2 }
 0x1c7   :  { %1359 = vmatprep.subr.mxu1 %v1589_v0 }
 0x1c8   :  { %1360 = vmatpush3.msra.mxu1 %v1654_v3 }
 0x1c9   :  { %1361 = vmatprep.subr.mxu1 %v1589_v0 }
 0x1ca   :  { %1362 = vmatpush3.msra.mxu1 %v1664_v5 }
 0x1cb   :  { %1363 = vmatprep.subr.mxu1 %v1589_v0 }
 0x1cc   :  { %1364 = vmatpush3.msra.mxu1 %v1677_v8 }
 0x1cd   :  { %1365 = vmatprep.subr.mxu1 %v1589_v0 }
 0x1ce   :  { %1366 = vmatpush3.msra.mxu1 %v1687_v10 }
 0x1cf   :  { %1367 = vmatprep.subr.mxu1 %v1589_v0 }
 0x1d0   :  { %1368 = vmatpush3.msra.mxu1 %v1696_v11 }
 0x1d1   :  { %1369 = vmatprep.subr.mxu1 %v1589_v0 }
 0x1d2   :  { %1370 = vmatpush3.msra.mxu1 %v1705_v12 }
 0x1d3   :  { %1371 = vmatprep.subr.mxu1 %v1589_v0 }
 0x1d4   :  { %1372 = vmatpush3.msra.mxu1 %v1714_v13 }
 0x1d5   :  { %1373 = vmatprep.subr.mxu1 %v1589_v0 }
 0x1d6   :  { %1374 = vmatpush3.msra.mxu1 %v1723_v14 }
 0x1d7   :  { %1375 = vmatprep.subr.mxu1 %v1589_v0 }
 0x1d8   :  { %1376 = vmatpush3.msra.mxu1 %v1732_v15 }
 0x1d9   :  { %1377 = vmatprep.subr.mxu1 %v1589_v0 }
 0x1da   :  { %1378 = vmatpush3.msra.mxu1 %v1741_v16 }
 0x1db   :  { %1379 = vmatprep.subr.mxu1 %v1589_v0 }
 0x1dc   :  { %1380 = vmatpush3.msra.mxu1 %v1750_v17 }
 0x1dd   :  { %1381 = vmatprep.subr.mxu1 %v1589_v0 }
 0x1de   :  { %1382 = vmatpush3.msra.mxu1 %v1759_v18 }
 0x1df   :  { %1383 = vmatprep.subr.mxu1 %v1589_v0 }
 0x1e0   :  { %1384 = vmatpush3.msra.mxu1 %v1768_v19 }
 0x1e1   :  { %1385 = vmatprep.subr.mxu1 %v1589_v0 }
 0x1e2   :  { %1386 = vmatpush3.msra.mxu1 %v1777_v20 }
 0x1e3   :  { %1425 = vmatprep.subr.mxu1 %v1589_v0 }
 0x283   :  { %v421_v47 = vpop.f32.mrf.mxu1 }
 0x284   :  { %v425_v48 = vadd.f32 %v421_v47, %v153_v46 }
 0x285   :  { %v1319_v49 = vpop.f32.mrf.mxu1 }
 0x286   :  { %1571 = vtanh.f32 %v425_v48 }
 0x293   :  { %v1572_v50 = vpop.eup %1571 }
 0x294   :  { %1353 = vmatmul.mubr.f32.vlgmr.msra.gmra.mxu0 %v1572_v50  ;;  %v989_v50 = vlaneseq }
 0x295   :  { %1391 = vmatpush3.msra.mxu0 %v1640_v1  ;;  %1422 = vmatprep.mubr.msk.f32.mxu0 %vm1590_vm0, %v1589_v0 }
 0x296   :  { %1392 = vmatprep.subr.mxu0 %v1589_v0 }
 0x297   :  { %1393 = vmatpush3.msra.mxu0 %v1645_v2 }
 0x298   :  { %1394 = vmatprep.subr.mxu0 %v1589_v0 }
 0x299   :  { %1395 = vmatpush3.msra.mxu0 %v1654_v3 }
 0x29a   :  { %1396 = vmatprep.subr.mxu0 %v1589_v0 }
 0x29b   :  { %1397 = vmatpush3.msra.mxu0 %v1664_v5 }
 0x29c   :  { %1398 = vmatprep.subr.mxu0 %v1589_v0 }
 0x29d   :  { %1399 = vmatpush3.msra.mxu0 %v1677_v8 }
 0x29e   :  { %1400 = vmatprep.subr.mxu0 %v1589_v0 }
 0x29f   :  { %1401 = vmatpush3.msra.mxu0 %v1687_v10 }
 0x2a0   :  { %1402 = vmatprep.subr.mxu0 %v1589_v0 }
 0x2a1   :  { %1403 = vmatpush3.msra.mxu0 %v1696_v11 }
 0x2a2   :  { %1404 = vmatprep.subr.mxu0 %v1589_v0 }
 0x2a3   :  { %1405 = vmatpush3.msra.mxu0 %v1705_v12 }
 0x2a4   :  { %1406 = vmatprep.subr.mxu0 %v1589_v0 }
 0x2a5   :  { %1407 = vmatpush3.msra.mxu0 %v1714_v13 }
 0x2a6   :  { %1408 = vmatprep.subr.mxu0 %v1589_v0 }
 0x2a7   :  { %1409 = vmatpush3.msra.mxu0 %v1723_v14 }
 0x2a8   :  { %1410 = vmatprep.subr.mxu0 %v1589_v0 }
 0x2a9   :  { %1411 = vmatpush3.msra.mxu0 %v1732_v15 }
 0x2aa   :  { %1412 = vmatprep.subr.mxu0 %v1589_v0 }
 0x2ab   :  { %1413 = vmatpush3.msra.mxu0 %v1741_v16 }
 0x2ac   :  { %1414 = vmatprep.subr.mxu0 %v1589_v0 }
 0x2ad   :  { %1415 = vmatpush3.msra.mxu0 %v1750_v17 }
 0x2ae   :  { %1416 = vmatprep.subr.mxu0 %v1589_v0 }
 0x2af   :  { %1417 = vmatpush3.msra.mxu0 %v1759_v18 }
 0x2b0   :  { %1418 = vmatprep.subr.mxu0 %v1589_v0 }
 0x2b1   :  { %1419 = vmatpush3.msra.mxu0 %v1768_v19 }
 0x2b2   :  { %1420 = vmatprep.subr.mxu0 %v1589_v0 }
 0x2b3   :  { %1421 = vmatpush3.msra.mxu0 %v1777_v20 }
 0x2b4   :  { %1460 = vmatprep.subr.mxu0 %v1589_v0 }
 0x354   :  { %v495_v52 = vpop.f32.mrf.mxu0 }
 0x355   :  { %v499_v53 = vadd.f32 %v495_v52, %v158_v51  ;;  %v990_v51 = vand.u32 127, %v989_v50  ;;  %v1018_v52 = vld [vmem:[%s2203_s7] ss:$0 sm:$0xff] }
 0x356   :  { %v1354_v54 = vpop.f32.mrf.mxu0 }
 0x357   :  { %1573 = vtanh.f32 %v499_v53  ;;  %vm991_vm2 = vcmp.lt.s32.totalorder %v990_v51, 5 }
 0x364   :  { %v1574_v55 = vpop.eup %1573 }
 0x365   :  { %1388 = vmatmul.mubr.f32.vlgmr.msra.gmra.mxu1 %v1574_v55 }
 0x366   :  { %1426 = vmatpush3.msra.mxu1 %v1640_v1  ;;  %1457 = vmatprep.mubr.msk.f32.mxu1 %vm1590_vm0, %v1589_v0 }
 0x367   :  { %1427 = vmatprep.subr.mxu1 %v1589_v0 }
 0x368   :  { %1428 = vmatpush3.msra.mxu1 %v1645_v2 }
 0x369   :  { %1429 = vmatprep.subr.mxu1 %v1589_v0 }
 0x36a   :  { %1430 = vmatpush3.msra.mxu1 %v1654_v3 }
 0x36b   :  { %1431 = vmatprep.subr.mxu1 %v1589_v0 }
 0x36c   :  { %1432 = vmatpush3.msra.mxu1 %v1664_v5 }
 0x36d   :  { %1433 = vmatprep.subr.mxu1 %v1589_v0 }
 0x36e   :  { %1434 = vmatpush3.msra.mxu1 %v1677_v8 }
 0x36f   :  { %1435 = vmatprep.subr.mxu1 %v1589_v0 }
 0x370   :  { %1436 = vmatpush3.msra.mxu1 %v1687_v10 }
 0x371   :  { %1437 = vmatprep.subr.mxu1 %v1589_v0 }
 0x372   :  { %1438 = vmatpush3.msra.mxu1 %v1696_v11 }
 0x373   :  { %1439 = vmatprep.subr.mxu1 %v1589_v0 }
 0x374   :  { %1440 = vmatpush3.msra.mxu1 %v1705_v12 }
 0x375   :  { %1441 = vmatprep.subr.mxu1 %v1589_v0 }
 0x376   :  { %1442 = vmatpush3.msra.mxu1 %v1714_v13 }
 0x377   :  { %1443 = vmatprep.subr.mxu1 %v1589_v0 }
 0x378   :  { %1444 = vmatpush3.msra.mxu1 %v1723_v14 }
 0x379   :  { %1445 = vmatprep.subr.mxu1 %v1589_v0 }
 0x37a   :  { %1446 = vmatpush3.msra.mxu1 %v1732_v15 }
 0x37b   :  { %1447 = vmatprep.subr.mxu1 %v1589_v0 }
 0x37c   :  { %1448 = vmatpush3.msra.mxu1 %v1741_v16 }
 0x37d   :  { %1449 = vmatprep.subr.mxu1 %v1589_v0 }
 0x37e   :  { %1450 = vmatpush3.msra.mxu1 %v1750_v17 }
 0x37f   :  { %1451 = vmatprep.subr.mxu1 %v1589_v0 }
 0x380   :  { %1452 = vmatpush3.msra.mxu1 %v1759_v18 }
 0x381   :  { %1453 = vmatprep.subr.mxu1 %v1589_v0 }
 0x382   :  { %1454 = vmatpush3.msra.mxu1 %v1768_v19 }
 0x383   :  { %1455 = vmatprep.subr.mxu1 %v1589_v0 }
 0x384   :  { %1456 = vmatpush3.msra.mxu1 %v1777_v20 }
 0x385   :  { %1495 = vmatprep.subr.mxu1 %v1589_v0 }
 0x425   :  { %v569_v57 = vpop.f32.mrf.mxu1 }
 0x426   :  { %v573_v58 = vadd.f32 %v569_v57, %v163_v56 }
 0x427   :  { %v1389_v59 = vpop.f32.mrf.mxu1 }
 0x428   :  { %1575 = vtanh.f32 %v573_v58 }
 0x435   :  { %v1576_v60 = vpop.eup %1575 }
 0x436   :  { %1423 = vmatmul.mubr.f32.vlgmr.msra.gmra.mxu0 %v1576_v60 }
 0x437   :  { %1461 = vmatpush3.msra.mxu0 %v1640_v1  ;;  %1492 = vmatprep.mubr.msk.f32.mxu0 %vm1590_vm0, %v1589_v0 }
 0x438   :  { %1462 = vmatprep.subr.mxu0 %v1589_v0 }
 0x439   :  { %1463 = vmatpush3.msra.mxu0 %v1645_v2 }
 0x43a   :  { %1464 = vmatprep.subr.mxu0 %v1589_v0 }
 0x43b   :  { %1465 = vmatpush3.msra.mxu0 %v1654_v3  ;;  %v817_v3 = vld [vmem:[%s2200_s4 + $0x78] sm:$0xff] }
 0x43c   :  { %1466 = vmatprep.subr.mxu0 %v1589_v0 }
 0x43d   :  { %1467 = vmatpush3.msra.mxu0 %v1664_v5  ;;  %v815_v5 = vld [vmem:[%s2200_s4 + $0x68] sm:$0xff] }
 0x43e   :  { %1468 = vmatprep.subr.mxu0 %v1589_v0 }
 0x43f   :  { %1469 = vmatpush3.msra.mxu0 %v1677_v8  ;;  %v812_v8 = vld [vmem:[%s2200_s4 + $0x50] sm:$0xff] }
 0x440   :  { %1470 = vmatprep.subr.mxu0 %v1589_v0 }
 0x441   :  { %1471 = vmatpush3.msra.mxu0 %v1687_v10  ;;  %v173_v10 = vadd.f32 %v1862_v28, %v1907_v40  ;;  %v902_v28 = vld [vmem:[%s2201_s6 + $0x30] sm:$0xff]  ;;  %v900_v40 = vld [vmem:[%s2201_s6 + $0x20] sm:$0xff] }
 0x442   :  { %1472 = vmatprep.subr.mxu0 %v1589_v0 }
 0x443   :  { %1473 = vmatpush3.msra.mxu0 %v1696_v11 }
 0x444   :  { %1474 = vmatprep.subr.mxu0 %v1589_v0 }
 0x445   :  { %1475 = vmatpush3.msra.mxu0 %v1705_v12 }
 0x446   :  { %1476 = vmatprep.subr.mxu0 %v1589_v0 }
 0x447   :  { %1477 = vmatpush3.msra.mxu0 %v1714_v13 }
 0x448   :  { %1478 = vmatprep.subr.mxu0 %v1589_v0 }
 0x449   :  { %1479 = vmatpush3.msra.mxu0 %v1723_v14 }
 0x44a   :  { %1480 = vmatprep.subr.mxu0 %v1589_v0 }
 0x44b   :  { %1481 = vmatpush3.msra.mxu0 %v1732_v15  ;;  %v810_v15 = vld [vmem:[%s2200_s4 + $0x40] sm:$0xff] }
 0x44c   :  { %1482 = vmatprep.subr.mxu0 %v1589_v0 }
 0x44d   :  { %1483 = vmatpush3.msra.mxu0 %v1741_v16  ;;  %v809_v16 = vld [vmem:[%s2200_s4 + $0x38] sm:$0xff] }
 0x44e   :  { %1484 = vmatprep.subr.mxu0 %v1589_v0 }
 0x44f   :  { %1485 = vmatpush3.msra.mxu0 %v1750_v17  ;;  %v808_v17 = vld [vmem:[%s2200_s4 + $0x30] sm:$0xff] }
 0x450   :  { %1486 = vmatprep.subr.mxu0 %v1589_v0 }
 0x451   :  { %1487 = vmatpush3.msra.mxu0 %v1759_v18  ;;  %v807_v18 = vld [vmem:[%s2200_s4 + $0x28] sm:$0xff] }
 0x452   :  { %1488 = vmatprep.subr.mxu0 %v1589_v0 }
 0x453   :  { %1489 = vmatpush3.msra.mxu0 %v1768_v19  ;;  %v806_v19 = vld [vmem:[%s2200_s4 + $0x20] sm:$0xff] }
 0x454   :  { %1490 = vmatprep.subr.mxu0 %v1589_v0 }
 0x455   :  { %1491 = vmatpush3.msra.mxu0 %v1777_v20  ;;  %v805_v20 = vld [vmem:[%s2200_s4 + $0x18] sm:$0xff] }
 0x456   :  { %1530 = vmatprep.subr.mxu0 %v1589_v0 }
 0x4f6   :  { %v643_v62 = vpop.f32.mrf.mxu0 }
 0x4f7   :  { %v647_v63 = vadd.f32 %v643_v62, %v168_v61 }
 0x4f8   :  { %v1424_v1 = vpop.f32.mrf.mxu0 }
 0x4f9   :  { %1577 = vtanh.f32 %v647_v63 }
 0x506   :  { %v1578_v2 = vpop.eup %1577 }
 0x507   :  { %1458 = vmatmul.mubr.f32.vlgmr.msra.gmra.mxu1 %v1578_v2 }
 0x508   :  { %1527 = vmatprep.mubr.msk.f32.mxu1 %vm1590_vm0, %v1589_v0  ;;  %1496 = vmatpush3.msra.mxu1 %v817_v3 }
 0x509   :  { %1497 = vmatprep.subr.mxu1 %v1589_v0 }
 0x50a   :  { %1498 = vmatpush3.msra.mxu1 %v816_v4 }
 0x50b   :  { %1499 = vmatprep.subr.mxu1 %v1589_v0 }
 0x50c   :  { %1500 = vmatpush3.msra.mxu1 %v815_v5 }
 0x50d   :  { %1501 = vmatprep.subr.mxu1 %v1589_v0 }
 0x50e   :  { %1502 = vmatpush3.msra.mxu1 %v814_v6 }
 0x50f   :  { %1503 = vmatprep.subr.mxu1 %v1589_v0 }
 0x510   :  { %1504 = vmatpush3.msra.mxu1 %v813_v7 }
 0x511   :  { %1505 = vmatprep.subr.mxu1 %v1589_v0 }
 0x512   :  { %1506 = vmatpush3.msra.mxu1 %v812_v8 }
 0x513   :  { %1507 = vmatprep.subr.mxu1 %v1589_v0 }
 0x514   :  { %1508 = vmatpush3.msra.mxu1 %v811_v9 }
 0x515   :  { %1509 = vmatprep.subr.mxu1 %v1589_v0 }
 0x516   :  { %1510 = vmatpush3.msra.mxu1 %v810_v15 }
 0x517   :  { %1511 = vmatprep.subr.mxu1 %v1589_v0 }
 0x518   :  { %1512 = vmatpush3.msra.mxu1 %v809_v16 }
 0x519   :  { %1513 = vmatprep.subr.mxu1 %v1589_v0 }
 0x51a   :  { %1514 = vmatpush3.msra.mxu1 %v808_v17 }
 0x51b   :  { %1515 = vmatprep.subr.mxu1 %v1589_v0 }
 0x51c   :  { %1516 = vmatpush3.msra.mxu1 %v807_v18 }
 0x51d   :  { %1517 = vmatprep.subr.mxu1 %v1589_v0 }
 0x51e   :  { %1518 = vmatpush3.msra.mxu1 %v806_v19 }
 0x51f   :  { %1519 = vmatprep.subr.mxu1 %v1589_v0 }
 0x520   :  { %1520 = vmatpush3.msra.mxu1 %v805_v20 }
 0x521   :  { %1521 = vmatprep.subr.mxu1 %v1589_v0 }
 0x522   :  { %1522 = vmatpush3.msra.mxu1 %v804_v21 }
 0x523   :  { %1523 = vmatprep.subr.mxu1 %v1589_v0 }
 0x524   :  { %1524 = vmatpush3.msra.mxu1 %v803_v22 }
 0x525   :  { %1525 = vmatprep.subr.mxu1 %v1589_v0 }
 0x526   :  { %1526 = vmatpush3.msra.mxu1 %v802_v23 }
 0x5c7   :  { %v717_v11 = vpop.f32.mrf.mxu1 }
 0x5c8   :  { %v721_v12 = vadd.f32 %v717_v11, %v173_v10 }
 0x5c9   :  { %v1459_v13 = vpop.f32.mrf.mxu1 }
 0x5ca   :  { %1579 = vtanh.f32 %v721_v12 }
 0x5d7   :  { %v1580_v14 = vpop.eup %1579 }
 0x5d8   :  { %1493 = vmatmul.mubr.f32.vlgmr.msra.gmra.mxu0 %v1580_v14 }
 0x5d9   :  { %1562 = vmatprep.mubr.msk.f32.mxu0 %vm1590_vm0, %v1589_v0  ;;  %1531 = vmatpush3.msra.mxu0 %v911_v24 }
 0x5da   :  { %1532 = vmatprep.subr.mxu0 %v1589_v0 }
 0x5db   :  { %1533 = vmatpush3.msra.mxu0 %v910_v25 }
 0x5dc   :  { %1534 = vmatprep.subr.mxu0 %v1589_v0 }
 0x5dd   :  { %1535 = vmatpush3.msra.mxu0 %v909_v26 }
 0x5de   :  { %1536 = vmatprep.subr.mxu0 %v1589_v0 }
 0x5df   :  { %1537 = vmatpush3.msra.mxu0 %v908_v27 }
 0x5e0   :  { %1538 = vmatprep.subr.mxu0 %v1589_v0 }
 0x5e1   :  { %1539 = vmatpush3.msra.mxu0 %v907_v29 }
 0x5e2   :  { %1540 = vmatprep.subr.mxu0 %v1589_v0 }
 0x5e3   :  { %1541 = vmatpush3.msra.mxu0 %v906_v30 }
 0x5e4   :  { %1542 = vmatprep.subr.mxu0 %v1589_v0 }
 0x5e5   :  { %1543 = vmatpush3.msra.mxu0 %v905_v31 }
 0x5e6   :  { %1544 = vmatprep.subr.mxu0 %v1589_v0 }
 0x5e7   :  { %1545 = vmatpush3.msra.mxu0 %v904_v37 }
 0x5e8   :  { %1546 = vmatprep.subr.mxu0 %v1589_v0 }
 0x5e9   :  { %1547 = vmatpush3.msra.mxu0 %v903_v38 }
 0x5ea   :  { %1548 = vmatprep.subr.mxu0 %v1589_v0 }
 0x5eb   :  { %1549 = vmatpush3.msra.mxu0 %v902_v28 }
 0x5ec   :  { %1550 = vmatprep.subr.mxu0 %v1589_v0 }
 0x5ed   :  { %1551 = vmatpush3.msra.mxu0 %v901_v39 }
 0x5ee   :  { %1552 = vmatprep.subr.mxu0 %v1589_v0 }
 0x5ef   :  { %1553 = vmatpush3.msra.mxu0 %v900_v40 }
 0x5f0   :  { %1554 = vmatprep.subr.mxu0 %v1589_v0 }
 0x5f1   :  { %1555 = vmatpush3.msra.mxu0 %v899_v41 }
 0x5f2   :  { %1556 = vmatprep.subr.mxu0 %v1589_v0 }
 0x5f3   :  { %1557 = vmatpush3.msra.mxu0 %v898_v42 }
 0x5f4   :  { %1558 = vmatprep.subr.mxu0 %v1589_v0 }
 0x5f5   :  { %1559 = vmatpush3.msra.mxu0 %v897_v43 }
 0x5f6   :  { %1560 = vmatprep.subr.mxu0 %v1589_v0 }
 0x5f7   :  { %1561 = vmatpush3.msra.mxu0 %v896_v44 }
 0x698   :  { %v791_v33 = vpop.f32.mrf.mxu0 }
 0x699   :  { %v795_v34 = vadd.f32 %v791_v33, %v178_v32 }
 0x69a   :  { %v1494_v35 = vpop.f32.mrf.mxu0 }
 0x69b   :  { %1581 = vtanh.f32 %v795_v34 }
 0x6a8   :  { %v1582_v36 = vpop.eup %1581 }
 0x6a9   :  { %1528 = vmatmul.mubr.f32.vlgmr.msra.gmra.mxu1 %v1582_v36 }
 0x769   :  { %v891_v46 = vpop.f32.mrf.mxu1 }
 0x76a   :  { %v892_v47 = vadd.f32 %v1017_v45, %v891_v46 }
 0x76b   :  { %v1529_v48 = vpop.f32.mrf.mxu1 }
 0x76c   :  { %1583 = vtanh.f32 %v892_v47 }
 0x779   :  { %v1584_v49 = vpop.eup %1583 }
 0x77a   :  { %1563 = vmatmul.mubr.f32.vlgmr.msra.gmra.mxu0 %v1584_v49 }
 0x83a   :  { %v985_v53 = vpop.f32.mrf.mxu0 }
 0x83b   :  { %v986_v0 = vadd.f32 %v1018_v52, %v985_v53 }
 0x83c   :  { %v1564_v54 = vpop.f32.mrf.mxu0 }
 0x83d   :  { %v992_v55 = vsel %vm991_vm2, %v986_v0, -1e+30 }
 0x83e   :  { %993 = vmax.xlane.f32.xlu0 %v992_v55 }
 0x8c7   :  { %v994_v56 = vpop.xlane.xlu0 %993 }
 0x8c8   :  { %v995_v57 = vsub.f32 %v992_v55, %v994_v56 }
 0x8ca   :  { %v996_v58 = vmul.f32 1.442695, %v995_v57 }
 0x8cc   :  { %1585 = vpow2.f32 %v996_v58 }
 0x8d9   :  { %v1586_v59 = vpop.eup %1585 }
 0x8da   :  { %998 = vadd.xlane.f32.xlu0 %v1586_v59 }
 0x963   :  { %v999_v60 = vpop.xlane.xlu0 %998 }
 0x964   :  { %1587 = vlog2.f32 %v999_v60 }
 0x971   :  { %v1588_v61 = vpop.eup %1587 }
 0x972   :  { %v1001_v62 = vmul.f32 0.6931472, %v1588_v61 }
 0x974   :  { %v1002_v63 = vsub.f32 %v995_v57, %v1001_v62 }
 0x976   :  { %1003 = vst [vmem:[%s2204_s8] sm:$0xff] %v1002_v63 }

</bundles_post_ra>
